<compile_context>
chip_gen: v5e
topology: v5e:2x2
jax: 0.10.0
libtpu: 0.0.40
codegen_flags: <defaults>
</compile_context>

<pallas_src>
import functools

import jax
import jax.numpy as jnp
from jax.experimental import pallas as pl
from jax.experimental.pallas import tpu as pltpu


# ---------------------------------------------------------------------------
# sin/cos table construction (cached: built once per config, like the PyTorch
# registered buffers, instead of per forward call)
# ---------------------------------------------------------------------------
def _build_sin_cos(seq_len, dim, base=10000.0):
    """Mirrors RotaryEmbedding._build_sin_cos (repeat_interleave along dim)."""
    inv_freq = 1.0 / (base ** (jnp.arange(0, dim // 2, dtype=jnp.float32) / dim))
    pos = jnp.arange(seq_len, dtype=jnp.float32)
    angles = pos[:, None] * inv_freq[None, :]              # (seq, dim/2)
    sin = jnp.repeat(jnp.sin(angles), 2, axis=-1)          # (seq, dim)
    cos = jnp.repeat(jnp.cos(angles), 2, axis=-1)          # (seq, dim)
    return sin, cos


@functools.lru_cache(maxsize=64)
def _get_tables(S, D, offset, base, max_seq_len, dtype_name):
    """Sign-folded sin + cos tables, cached by (S, D, offset, base, max, dtype)."""
    # Match the PyTorch forward: precomputed max_seq_len buffers unless
    # offset > 0 or the sequence length differs; then rebuild and slice.
    if offset > 0 or S != max_seq_len:
        sin, cos = _build_sin_cos(S + offset, D, base)
        sin = sin[offset:offset + S]
        cos = cos[offset:offset + S]
    else:
        sin, cos = _build_sin_cos(max_seq_len, D, base)

    # Fold rotate_half's sign into the sin table:
    #   rotate_half(x) * sin == half_swap(x) * sin_signed
    #   sin_signed[:, :D/2] = -sin, sin_signed[:, D/2:] = +sin.
    half = D // 2
    sign = jnp.concatenate(
        [jnp.full((half,), -1.0, jnp.float32),
         jnp.full((half,), 1.0, jnp.float32)])
    dtype = jnp.dtype(dtype_name)
    sin_signed = (sin * sign[None, :]).astype(dtype)
    cos = cos.astype(dtype)
    return sin_signed, cos


# ---------------------------------------------------------------------------
# Tiling helpers
# ---------------------------------------------------------------------------
def _choose_seq_tile(S, D, itemsize, row_multiple, target_bytes):
    """Largest row_multiple-aligned tile whose (TS, D) block fits target_bytes.

    If the whole sequence fits the budget, return the full extent (always
    layout-legal); otherwise return a multiple of row_multiple and let
    cdiv-based tiling mask the ragged last tile.
    """
    row_bytes = max(1, D * itemsize)
    budget_rows = (target_bytes // row_bytes) // row_multiple * row_multiple
    budget_rows = max(row_multiple, int(budget_rows))
    if budget_rows >= S:
        return S
    return budget_rows


def _block_spec(block_shape, index_map, buffer_count=None):
    """BlockSpec with optional explicit buffer count (falls back gracefully)."""
    if buffer_count is None:
        return pl.BlockSpec(block_shape, index_map)
    try:
        return pl.BlockSpec(block_shape, index_map,
                            pipeline_mode=pl.Buffered(buffer_count))
    except TypeError:
        # Older jax without pipeline_mode= -- default double-buffering.
        return pl.BlockSpec(block_shape, index_map)


# ---------------------------------------------------------------------------
# Kernel
# ---------------------------------------------------------------------------
def rope_kernel(x_ref, sin_ref, cos_ref, o_ref):
    # x_ref / sin_ref / cos_ref / o_ref: (TS, D) VMEM tiles.
    # sin_ref already carries the rotate_half sign (first half negated).
    x = x_ref[...]
    d = x.shape[-1]
    half = d // 2
    if d % 128 == 0:
        # Lane-dense fast path: half swap on the XLU (free relative to VPU).
        rot = pltpu.roll(x, shift=half, axis=x.ndim - 1)
    else:
        # Lane-sparse fallback for toy dims (D < 128).
        rot = jnp.concatenate([x[..., half:], x[..., :half]], axis=-1)
    o_ref[...] = x * cos_ref[...] + rot * sin_ref[...]


# ---------------------------------------------------------------------------
# Wrapper
# ---------------------------------------------------------------------------
def rotary_embedding(x, offset=0, base=10000.0, max_seq_len=512, *,
                     target_block_bytes=3 << 20, donate_x=False):
    """Forward pass of RotaryEmbedding on x of shape (B, S, D)."""
    B, S, D = x.shape
    if D % 2 != 0:
        raise ValueError("dim must be even")

    dtype_name = jnp.dtype(x.dtype).name
    sin_signed, cos = _get_tables(int(S), int(D), int(offset), float(base),
                                  int(max_seq_len), dtype_name)

    itemsize = jnp.dtype(x.dtype).itemsize
    row_multiple = 16 if itemsize == 2 else 8   # bf16 sublane packing
    TS = _choose_seq_tile(S, D, itemsize, row_multiple, target_block_bytes)
    n_s = pl.cdiv(S, TS)

    # v7x shards the "parallel" grid across 2 TensorCores: make sure there are
    # at least 2 grid steps for small single-batch shapes.
    if n_s * B < 2 and S > row_multiple:
        half_s = (S + 1) // 2
        ts2 = ((half_s + row_multiple - 1) // row_multiple) * row_multiple
        if ts2 < S:
            TS = ts2
            n_s = pl.cdiv(S, TS)

    # VMEM budget: x + out double-buffered, sin + cos single-buffered.
    # Explicit limit covers v5e's 16 MiB scoped default; capped well under
    # v7x's 64 MiB physical VMEM.
    block_bytes = TS * D * itemsize
    vmem_limit = int(min(48 << 20, max(32 << 20, 10 * block_bytes)))

    cost = pl.CostEstimate(
        flops=3 * B * S * D,
        transcendentals=0,
        bytes_accessed=(2 * B * S * D + 2 * S * D) * itemsize,
    )

    out = pl.pallas_call(
        rope_kernel,
        out_shape=jax.ShapeDtypeStruct((B, S, D), x.dtype),
        # Batch innermost: sin/cos block index is constant across the inner
        # loop, so the tables are DMA'd once per sequence tile, not per (s,b).
        grid=(n_s, B),
        in_specs=[
            _block_spec((None, TS, D), lambda s, b: (b, s, 0)),          # x
            _block_spec((TS, D), lambda s, b: (s, 0), buffer_count=1),   # sin*
            _block_spec((TS, D), lambda s, b: (s, 0), buffer_count=1),   # cos
        ],
        out_specs=pl.BlockSpec((None, TS, D), lambda s, b: (b, s, 0)),
        compiler_params=pltpu.CompilerParams(
            dimension_semantics=("parallel", "parallel"),
            vmem_limit_bytes=vmem_limit),
        cost_estimate=cost,
        input_output_aliases=({0: 0} if donate_x else {}),
    )(x, sin_signed, cos)
    return out


# ---------------------------------------------------------------------------
# Pure-JAX reference (direct transcription of the PyTorch forward)
# ---------------------------------------------------------------------------
def _reference(x, offset=0, base=10000.0, max_seq_len=512):
    B, S, D = x.shape
    if offset > 0 or S != max_seq_len:
        sin, cos = _build_sin_cos(S + offset, D, base)
        sin = sin[offset:offset + S]
        cos = cos[offset:offset + S]
    else:
        sin, cos = _build_sin_cos(max_seq_len, D, base)
    sin = sin.astype(x.dtype)
    cos = cos.astype(x.dtype)
    half = D // 2
    rot = jnp.concatenate([-x[..., half:], x[..., :half]], axis=-1)
    return x * cos[None] + rot * sin[None]


if __name__ == "__main__":
    key = jax.random.PRNGKey(0)

    # Toy shape consistent with the module: batch=2, seq=8, dim=32
    B, S, D = 2, 8, 32
    x = jax.random.normal(key, (B, S, D), dtype=jnp.float32)
    out = jax.block_until_ready(rotary_embedding(x, offset=0))
    ref = _reference(x, offset=0)
    assert out.shape == x.shape and out.dtype == x.dtype
    assert jnp.allclose(out, ref, atol=1e-5, rtol=1e-5)

    # Lane-dense shape exercising the XLU-roll fast path (D % 128 == 0).
    x2 = jax.random.normal(jax.random.PRNGKey(1), (2, 64, 128), dtype=jnp.float32)
    out2 = jax.block_until_ready(rotary_embedding(x2, offset=0))
    assert jnp.allclose(out2, _reference(x2, offset=0), atol=1e-5, rtol=1e-5)

    # Ragged seq (non-multiple of 8), offset path, and single-batch tile split
    # (exercises cdiv tiling + the >=2 parallel-steps rule).
    x3 = jax.random.normal(jax.random.PRNGKey(2), (1, 35, 128), dtype=jnp.float32)
    out3 = jax.block_until_ready(rotary_embedding(x3, offset=3))
    assert jnp.allclose(out3, _reference(x3, offset=3), atol=1e-5, rtol=1e-5)

    print("KERNEL_OK")
</pallas_src>

<mosaic_0001>
module attributes {stable_mosaic.version = 11 : i64} {
  func.func @rope_kernel(%arg0: i32, %arg1: i32, %arg2: memref<1x8x32xf32, #tpu.memory_space<vmem>>, %arg3: memref<8x32xf32, #tpu.memory_space<vmem>>, %arg4: memref<8x32xf32, #tpu.memory_space<vmem>>, %arg5: memref<1x8x32xf32, #tpu.memory_space<vmem>>) attributes {dimension_semantics = [#tpu.dimension_semantics<parallel>, #tpu.dimension_semantics<parallel>], iteration_bounds = array<i64: 1, 2>, scalar_prefetch = 0 : i64, scratch_operands = 0 : i64, tpu.core_type = #tpu.core_type<tc>, window_params = [{transform_indices = @transform_0, window_bounds = array<i64: 1, 8, 32>}, {pipeline_mode = #tpu.pipeline_mode<synchronous>, transform_indices = @transform_1, window_bounds = array<i64: 8, 32>}, {pipeline_mode = #tpu.pipeline_mode<synchronous>, transform_indices = @transform_2, window_bounds = array<i64: 8, 32>}, {transform_indices = @transform_3, window_bounds = array<i64: 1, 8, 32>}]} {
    %c0 = arith.constant 0 : index
    %c0_0 = arith.constant 0 : index
    %c0_1 = arith.constant 0 : index
    %0 = vector.load %arg2[%c0, %c0_0, %c0_1] : memref<1x8x32xf32, #tpu.memory_space<vmem>>, vector<1x8x32xf32>
    %1 = vector.shape_cast %0 : vector<1x8x32xf32> to vector<8x32xf32>
    %2 = vector.extract_strided_slice %1 {offsets = [0, 16], sizes = [8, 16], strides = [1, 1]} : vector<8x32xf32> to vector<8x16xf32>
    %3 = vector.extract_strided_slice %1 {offsets = [0, 0], sizes = [8, 16], strides = [1, 1]} : vector<8x32xf32> to vector<8x16xf32>
    %4 = tpu.concatenate %2, %3 in 1 : vector<8x16xf32>, vector<8x16xf32> -> vector<8x32xf32>
    %c0_2 = arith.constant 0 : index
    %c0_3 = arith.constant 0 : index
    %5 = vector.load %arg4[%c0_2, %c0_3] : memref<8x32xf32, #tpu.memory_space<vmem>>, vector<8x32xf32>
    %6 = arith.mulf %1, %5 : vector<8x32xf32>
    %c0_4 = arith.constant 0 : index
    %c0_5 = arith.constant 0 : index
    %7 = vector.load %arg3[%c0_4, %c0_5] : memref<8x32xf32, #tpu.memory_space<vmem>>, vector<8x32xf32>
    %8 = arith.mulf %4, %7 : vector<8x32xf32>
    %9 = arith.addf %6, %8 : vector<8x32xf32>
    %c0_6 = arith.constant 0 : index
    %c0_7 = arith.constant 0 : index
    %c0_8 = arith.constant 0 : index
    %10 = vector.load %arg5[%c0_6, %c0_7, %c0_8] : memref<1x8x32xf32, #tpu.memory_space<vmem>>, vector<1x8x32xf32>
    %11 = vector.shape_cast %10 : vector<1x8x32xf32> to vector<8x32xf32>
    %12 = vector.shape_cast %9 : vector<8x32xf32> to vector<1x8x32xf32>
    tpu.vector_store %arg5[%c0_6, %c0_7, %c0_8], %12 {strides = array<i32>} : memref<1x8x32xf32, #tpu.memory_space<vmem>>, vector<1x8x32xf32>,
    return
  }
  func.func @transform_0(%arg0: i32, %arg1: i32) -> (i32, i32, i32) {
    %c0_i32 = arith.constant 0 : i32
    %c0_i32_0 = arith.constant 0 : i32
    return %arg1, %arg0, %c0_i32 : i32, i32, i32
  }
  func.func @transform_1(%arg0: i32, %arg1: i32) -> (i32, i32) {
    %c0_i32 = arith.constant 0 : i32
    %c0_i32_0 = arith.constant 0 : i32
    return %arg0, %c0_i32 : i32, i32
  }
  func.func @transform_2(%arg0: i32, %arg1: i32) -> (i32, i32) {
    %c0_i32 = arith.constant 0 : i32
    %c0_i32_0 = arith.constant 0 : i32
    return %arg0, %c0_i32 : i32, i32
  }
  func.func @transform_3(%arg0: i32, %arg1: i32) -> (i32, i32, i32) {
    %c0_i32 = arith.constant 0 : i32
    %c0_i32_0 = arith.constant 0 : i32
    return %arg1, %arg0, %c0_i32 : i32, i32, i32
  }
}

</mosaic_0001>

<bundles_post_ra>
// kernel: tpu_custom_call.1
= control target key start
LH: loop header
LB: loop body
LE: loop exit
PB: predicated region body
PF: predicated region fallthrough
CT: control target
= control target key end

     0   :  { %8 = vsyncpa [#allocation3], 0  ;;  %s831_s0 = inlined_call_operand.hbm [shape: f32[2,8,32], index: 0, kind: input, shape index: {}]   ;;  %s832_s1 = inlined_call_operand.hbm [shape: f32[8,32], index: 1, kind: input, shape index: {}]   ;;  %s833_s2 = inlined_call_operand.hbm [shape: f32[8,32], index: 2, kind: input, shape index: {}]   ;;  %s834_s3 = inlined_call_operand.hbm [shape: f32[2,8,32], index: 3, kind: output, shape index: {}]  }
   0x1   :  { %10 = vsyncpa [#allocation3 + $0x1], 0 }
   0x2   :  { %11 = vsyncpa [#allocation6], 0 }
   0x3   :  { %12 = vsyncpa [#allocation4], 0 }
   0x4   :  { %14 = vsyncpa [#allocation4 + $0x1], 0  ;;  %s689_s12 = smov 0   ;;  %s691_s13 = smov 0  }
   0x5   :  { %s693_s14 = smov 0   ;;  %s695_s15 = smov 0  }
   0x6   :  { %s697_s16 = smov 0   ;;  %s699_s17 = smov 0  }
   0x7 LB: > { %s385_s18 = sadd.s32 4294967295, %s663_s17   ;;  %s386_s19 = sadd.s32 4294967294, %s663_s17   ;;  %s663_s17 = sphi %s699_s17, %s20_s17   ;;  %s659_s16 = sphi %s697_s16, %s844_s16   ;;  %s655_s15 = sphi %s695_s15, %s843_s15   ;;  %s651_s14 = sphi %s693_s14, %s842_s14   ;;  %s647_s13 = sphi %s691_s13, %s841_s13   ;;  %s643_s12 = sphi %s689_s12, %s840_s12  }
   0x8   : > { %p54_p0 = scmp.ne.s32.totalorder %s647_s13, %s643_s12  ;;  %p723_p1 = scmp.eq.s32.totalorder %s385_s18, 0 }
   0x9   : > { %p138_p2 = scmp.eq.s32.totalorder %s386_s19, 1  ;;  %p387_p4 = scmp.ge.s32.totalorder %s663_s17, 1 }
   0xa   : > { %p729_p3 = por %p723_p1, %p54_p0  ;;  %p145_p6 = scmp.lt.s32.totalorder %s663_s17, 3 }
   0xb   : > { %p734_p5 = por %p138_p2, %p54_p0  ;;  %s159_s25 = sshll.u32 %s832_s1, 4  ;;  %s160_s25 = int_to_ptr.hbm [resolvable:$true] %s159_s25 }
   0xc   : > { %p742_p7 = pnand %p387_p4, %p145_p6  ;;  %p390_p8 = scmp.ge.s32.totalorder %s663_s17, 2 }
   0xd   : > { %s665_s27 = smov [#allocation5]   ;;  %s173_s4 = sshll.u32 %s833_s2, 4  ;;  %s174_s4 = int_to_ptr.hbm [resolvable:$true] %s173_s4 }
   0xe   : > { %p414_p9 = pneg %p742_p7  ;;  %s161_s28 = sshll.u32 %s665_s27, 4  ;;  %s162_s28 = int_to_ptr.vmem [resolvable:$true] %s161_s28 }
   0xf   : > { %s666_s5 = smov [#allocation7]   ;;  %p132_p11 = scmp.eq.s32.totalorder %s385_s18, 1 }
  0x10   : > { %p415_p10 = pnand %p414_p9, %p723_p1  ;;  %s175_s6 = sshll.u32 %s666_s5, 4  ;;  %s176_s6 = int_to_ptr.vmem [resolvable:$true] %s175_s6 }
  0x11   : > { %s29_s7 = sadd.s32 1, %s659_s16  ;;  %s41_s8 = sadd.s32 1, %s651_s14 }
  0x12   : > { %417 = dma.hbm_to_vmem [thread:$0]  (!%p415_p10), %s160_s25, 128, %s162_s28, [#allocation6]  }
  0x13   : > { %420 = dma.hbm_to_vmem [thread:$0]  (!%p415_p10), %s174_s4, 128, %s176_s6, [#allocation6]  }
  0x14   : > { %p30_p12 = scmp.ge.s32.totalorder %s29_s7, 2  ;;  %p48_p13 = scmp.ne.s32.totalorder %s651_s14, %s647_s13 }
  0x15   : > { %p49_p0 = scmp.eq.s32.totalorder %s663_s17, 0  ;;  %p431_p4 = scmp.lt.s32.totalorder %s663_s17, 2 }
  0x16   : > { %s846_s7 = smov (%p30_p12, %s29_s7), 0  ;;  %p761_p2 = por %p132_p11, %p48_p13 }
  0x17   : > { %s36_s10 = ssub.s32 %s659_s16, %s846_s7  ;;  %s186_s11 = sand.u32 1, %s651_s14  }
  0x18   : > { %p39_p6 = scmp.eq.s32.totalorder %s36_s10, 0  ;;  %p50_p9 = por %p49_p0, %p48_p13 }
  0x19   : > { %s391_s19 = sshll.u32 %s186_s11, 3  ;;  %s392_s18 = sshll.u32 %s659_s16, 3 }
  0x1a   : > { %s771_s23 = scalar_select %p39_p6, %s651_s14, %s41_s8  }
  0x1b   : > { %s195_s27 = scalar_lea.hbm %s831_s0, %s392_s18  ;;  %s190_s29 = scalar_lea.vmem [#allocation2], %s391_s19 }
  0x1c   : > { %s197_s28 = sshll.u32 %s195_s27, 4  ;;  %s199_s30 = sshll.u32 %s190_s29, 4  ;;  %s198_s28 = int_to_ptr.hbm [resolvable:$true] %s197_s28  ;;  %s200_s30 = int_to_ptr.vmem [resolvable:$true] %s199_s30 }
  0x1d   : > { %p422_p10 = pnand %p431_p4, %p50_p9  ;;  %s187_s4 = scalar_lea.sflag [#allocation3], %s186_s11 }
  0x1e   : > { %208 = sbr.rel (%p742_p7) target bundleno = 170 (0xaa), region = 32  ;;  %s781_s5 = sand.u32 (!%p742_p7), 1, %s647_s13  }
  0x1f   : > { %424 = dma.hbm_to_vmem [thread:$0]  (!%p422_p10), %s198_s28, 128, %s200_s30, %s187_s4  }
  0x20   : > { %s394_s6 = sshll.u32 (!%p742_p7), %s781_s5, 3  ;;  %s211_s8 = scalar_lea.sflag (!%p742_p7), [#allocation3], %s781_s5 }
  0x21   : > { %s214_s10 = scalar_lea.vmem (!%p742_p7), [#allocation2], %s394_s6 }
  0x23   : > { %630 = dma.done.wait (%p729_p3), %s211_s8, 128  }
  0x24   : > { %632 = vsyncadd (%p729_p3), %s211_s8, 4294967168 }
  0x25   : > { %634 = dma.done.wait (%p723_p1), [#allocation6], 256  }
  0x26   : > { %636 = vsyncadd (%p723_p1), [#allocation6], 4294967040  ;;  %v248_v0 = vld [vmem:[%s214_s10] sm:$0xff]  ;;  %s667_s26 = smov 112   ;;  %s668_s11 = smov 16   ;;  %v258_v2 = vld [vmem:[#allocation7] sm:$0xff] }
  0x27   : > { %250 = vrot.lane.b32.xlu0 %v248_v0, %s667_s26  ;;  %s399_s19 = sshll.u32 %s655_s15, 3  ;;  %vm256_vm0 = vcmask 130048   ;;  %v260_v3 = vld [vmem:[#allocation5] sm:$0xff]  ;;  %v259_v4 = vmul.f32 %v258_v2, %v248_v0  ;;  %s247_s20 = scalar_lea.vmem [#allocation8], %s394_s6  ;;  %vm263_vm1 = vcmask 261120  }
  0x28   : > { %s277_s24 = scalar_lea.hbm %s834_s3, %s399_s19  ;;  %s279_s25 = sshll.u32 %s247_s20, 4  ;;  %s280_s25 = int_to_ptr.vmem [resolvable:$true] %s279_s25 }
  0x29   : > { %s281_s27 = sshll.u32 %s277_s24, 4  ;;  %s266_s15 = scalar_lea.sflag [#allocation4], %s781_s5  ;;  %s282_s27 = int_to_ptr.hbm [resolvable:$true] %s281_s27 }
  0x2a   : > { %s591_s28 = sshra.s32 %s282_s27, 4  ;;  %s597_s6 = scalar_lea.hbm %s834_s3, 16  ;;  %s592_s28 = int_to_ptr.hbm [resolvable:$true] %s591_s28 }
  0x2b   : > { %s593_s29 = scalar_lea.hbm %s592_s28, 8  ;;  %p598_p11 = scmp.lt.s32.totalorder %s592_s28, %s834_s3 }
  0x2c   : > { %p594_p1 = scmp.ne.s32.totalorder %s592_s28, %s593_s29  ;;  %p599_p12 = scmp.lt.s32.totalorder %s597_s6, %s593_s29 }
  0x2e   : > { %p595_p3 = pnand %p594_p1, %p761_p2  ;;  %p600_p13 = por %p599_p12, %p598_p11 }
  0x2f   : > { %253 = vrot.lane.b32.xlu0 %v248_v0, %s668_s11 }
  0x30   : > { %p596_p7 = pneg %p595_p3 }
  0x32   : > { %p601_p0 = pnand %p600_p13, %p596_p7 }
  0x99   : > { %v251_v1 = vpop.permute.xlu0 %250 }
  0xa1   : > { %v254_v5 = vpop.permute.xlu0 %253 }
  0xa2   : > { %v257_v6 = vsel %vm256_vm0, %v251_v1, %v254_v5 }
  0xa3   : > { %v261_v7 = vmul.f32 %v260_v3, %v257_v6 }
  0xa5   : > { %v262_v8 = vadd.f32 %v261_v7, %v259_v4 }
  0xa7   : > { %264 = vst.msk [vmem:[%s247_s20] sm:$0xff] %vm263_vm1, %v262_v8 }
  0xa8   : > { %604 = shalt.err (!%p601_p0)
}
  0xa9   : > { %412 = dma.vmem_to_hbm [thread:$0]  (%p761_p2), %s280_s25, 128, %s282_s27, %s266_s15  }
  0xaa PF: > { %s293_s5 = sand.u32 1, %s643_s12   ;;  %p426_p4 = pnand %p390_p8, %p734_p5 }
  0xab   : > { %s294_s26 = scalar_lea.sflag [#allocation4], %s293_s5 }
  0xac   : > { %p427_p6 = pneg %p426_p4 }
  0xae   : > { %638 = dma.done.wait (%p427_p6), %s294_s26, 128  }
  0xaf   : > { %640 = vsyncadd (%p427_p6), %s294_s26, 4294967168  ;;  %s20_s17 = sadd.s32 1, %s663_s17   ;;  %s840_s12 = smov %s647_s13 }
  0xb0   : > { %p17_p9 = scmp.ge.s32.totalorder %s20_s17, 4   ;;  %s841_s13 = smov %s651_s14 }
  0xb1   : > { %s842_s14 = smov %s771_s23  ;;  %s843_s15 = smov %s659_s16 }
  0xb2   : > { %s844_s16 = smov %s846_s7  ;;  %19 = sbr.rel (!%p17_p9) target bundleno = 7 (0x7), region = 87 }
  0xb7   :  { %300 = vsyncpa [#allocation3], 1 }
  0xb8   :  { %302 = vsyncpa [#allocation3 + $0x1], 1 }
  0xb9   :  { %303 = vsyncpa [#allocation6], 1 }
  0xba   :  { %304 = vsyncpa [#allocation4], 1 }
  0xbb   :  { %306 = vsyncpa [#allocation4 + $0x1], 1 }

</bundles_post_ra>
